<compile_context>
chip_gen: v7x
topology: tpu7x:2x2x1
jax: 0.10.0
libtpu: 0.0.40
codegen_flags: <defaults>
</compile_context>

<pallas_src>
import functools

import jax
import jax.numpy as jnp
import numpy as np
from jax import lax
from jax.experimental import pallas as pl
from jax.experimental.pallas import tpu as pltpu


# ----------------------------------------------------------------------------
# Static interpolation weights (align_corners=True bilinear), numpy + cached.
# ----------------------------------------------------------------------------
@functools.lru_cache(maxsize=None)
def _interp_matrix_1d_np(n_out: int, n_in: int) -> np.ndarray:
    i = np.arange(n_out, dtype=np.float64)
    if n_out > 1:
        src = i * ((n_in - 1) / (n_out - 1))
    else:
        src = np.zeros_like(i)
    lo = np.clip(np.floor(src).astype(np.int64), 0, n_in - 1)
    hi = np.minimum(lo + 1, n_in - 1)
    frac = src - lo
    m = np.zeros((n_out, n_in), dtype=np.float32)
    rows = np.arange(n_out)
    np.add.at(m, (rows, lo), (1.0 - frac).astype(np.float32))
    np.add.at(m, (rows, hi), frac.astype(np.float32))
    # Rows sum to 1 -> folding the conv bias before the resize is exact.
    assert np.allclose(m.sum(axis=1), 1.0, atol=1e-6)
    return m


# ----------------------------------------------------------------------------
# VMEM-budget-aware tile pickers.
# ----------------------------------------------------------------------------
def _pick_spatial_tile(s: int, bytes_per_col: int, budget: int = 8 << 20) -> int:
    """Largest multiple-of-128 divisor of s fitting the byte budget (else s)."""
    max_cols = max(budget // max(bytes_per_col, 1), 128)
    if s <= max_cols:
        return s
    t = (max_cols // 128) * 128
    while t >= 128:
        if s % t == 0:
            return t
        t -= 128
    return s


def _pick_row_tile(ho: int, bytes_per_row: int, budget: int = 8 << 20) -> int:
    """Largest multiple-of-8 divisor of ho fitting the byte budget (else ho)."""
    max_rows = max(budget // max(bytes_per_row, 1), 8)
    if ho <= max_rows:
        return ho
    t = (max_rows // 8) * 8
    while t >= 8:
        if ho % t == 0:
            return t
        t -= 8
    return ho


def _vmem_limit(block_bytes: int) -> int:
    # Double-buffered blocks + headroom, clamped to stay inside v7x's 64 MiB VMEM.
    return int(min(max(2 * block_bytes + (8 << 20), 32 << 20), 64 << 20))


# ----------------------------------------------------------------------------
# Kernel 1: 1x1 conv (channel reduce 256 -> 128) + bias, channel-major.
#   x_ref: (1, C_in, TS) f32 ; w_ref: (C_out, C_in) bf16 ; b_ref: (C_out, 1) f32
#   o_ref: (1, C_out, TS) f32 or bf16
# ----------------------------------------------------------------------------
def _conv1x1_bias_kernel(x_ref, w_ref, b_ref, o_ref):
    x = x_ref[0].astype(jnp.bfloat16)                       # cast in-kernel (VPU)
    y = jnp.dot(w_ref[...], x, preferred_element_type=jnp.float32)
    y = y + b_ref[...]                                      # f32 bias add
    o_ref[0] = y.astype(o_ref.dtype)


# ----------------------------------------------------------------------------
# Kernel 2: fused separable bilinear resize (height pass then width pass).
#   y_ref:   (1, C_out, Hi, Wi) bf16   conv(+bias) output, per image
#   kh_ref:  (THO, Hi)          bf16   rows of Kh for this output-row tile
#   kwt_ref: (Wi, Wo)           bf16   Kw transposed
#   o_ref:   (1, C_out, THO, Wo) f32
# All dynamic indexing is on leading (untiled) dims; no in-kernel reshapes.
# ----------------------------------------------------------------------------
def _resize_hw_kernel(y_ref, kh_ref, kwt_ref, o_ref):
    kh = kh_ref[...]
    kwt = kwt_ref[...]
    c_out = y_ref.shape[1]

    def body(c, carry):
        yc = y_ref[0, c, :, :]                                        # (Hi, Wi)
        zc = jnp.dot(kh, yc, preferred_element_type=jnp.float32)      # (THO, Wi)
        oc = jnp.dot(zc.astype(jnp.bfloat16), kwt,
                     preferred_element_type=jnp.float32)              # (THO, Wo)
        o_ref[0, c, :, :] = oc
        return carry

    lax.fori_loop(0, c_out, body, 0, unroll=8)


# ----------------------------------------------------------------------------
# Head branch: interpolate(feat, out_size, bilinear, align_corners=True) -> 1x1 conv.
# Implemented as conv-first + fused separable resize; mathematically identical.
# ----------------------------------------------------------------------------
def head_branch(feat_nchw, out_size, conv_w, conv_b):
    B, C_in, Hi, Wi = feat_nchw.shape
    Ho, Wo = out_size
    C_out = conv_w.shape[0]
    S = Hi * Wi
    identity = (Ho, Wo) == (Hi, Wi)

    w2d = conv_w.reshape(C_out, C_in).astype(jnp.bfloat16)       # (C_out, C_in)
    b2d = conv_b.reshape(C_out, 1).astype(jnp.float32)           # (C_out, 1)
    x_flat = feat_nchw.reshape(B, C_in, S)                       # metadata-only

    inter_dtype = jnp.float32 if identity else jnp.bfloat16
    inter_bytes = 4 if identity else 2

    # --- Pass 1: 1x1 conv + bias, tiled over the spatial (lane) axis -----------
    ts = _pick_spatial_tile(S, bytes_per_col=2 * (C_in * 4 + C_out * inter_bytes))
    conv_block_bytes = (C_in * ts * 4 + C_out * C_in * 2 + C_out * 512
                        + C_out * ts * inter_bytes)
    y = pl.pallas_call(
        _conv1x1_bias_kernel,
        out_shape=jax.ShapeDtypeStruct((B, C_out, S), inter_dtype),
        grid=(B, S // ts),
        in_specs=[
            pl.BlockSpec((1, C_in, ts), lambda b, s: (b, 0, s)),
            pl.BlockSpec((C_out, C_in), lambda b, s: (0, 0)),
            pl.BlockSpec((C_out, 1), lambda b, s: (0, 0)),
        ],
        out_specs=pl.BlockSpec((1, C_out, ts), lambda b, s: (b, 0, s)),
        compiler_params=pltpu.CompilerParams(
            dimension_semantics=("parallel", "parallel"),
            vmem_limit_bytes=_vmem_limit(conv_block_bytes),
        ),
    )(x_flat, w2d, b2d)

    if identity:
        # align_corners resize to the same size is the identity -> conv only.
        return y.reshape(B, C_out, Ho, Wo)

    # --- Pass 2: fused height + width bilinear resize, tiled over output rows ---
    kh = jnp.asarray(_interp_matrix_1d_np(Ho, Hi), dtype=jnp.bfloat16)      # (Ho, Hi)
    kwt = jnp.asarray(_interp_matrix_1d_np(Wo, Wi).T, dtype=jnp.bfloat16)   # (Wi, Wo)
    y4 = y.reshape(B, C_out, Hi, Wi)                                        # metadata-only

    tho = _pick_row_tile(Ho, bytes_per_row=2 * (C_out * Wo * 4 + Hi * 2))
    resize_block_bytes = (C_out * Hi * Wi * 2 + tho * Hi * 2 + Wi * Wo * 2
                          + C_out * tho * Wo * 4)
    out = pl.pallas_call(
        _resize_hw_kernel,
        out_shape=jax.ShapeDtypeStruct((B, C_out, Ho, Wo), jnp.float32),
        grid=(B, Ho // tho),
        in_specs=[
            pl.BlockSpec((1, C_out, Hi, Wi), lambda b, j: (b, 0, 0, 0)),
            pl.BlockSpec((tho, Hi), lambda b, j: (j, 0)),
            pl.BlockSpec((Wi, Wo), lambda b, j: (0, 0)),
        ],
        out_specs=pl.BlockSpec((1, C_out, tho, Wo), lambda b, j: (b, 0, j, 0)),
        compiler_params=pltpu.CompilerParams(
            dimension_semantics=("parallel", "parallel"),
            vmem_limit_bytes=_vmem_limit(resize_block_bytes),
        ),
    )(y4, kh, kwt)
    return out


class MiDasEncoderPallas:
    """Pallas version of MiDasEncoder's replaced head.

    forward(hidden_states) == (conv1(resize(hidden_states[-1], output_sizes[0])),
                               conv2(resize(hidden_states[-2], output_sizes[1])))
    """

    def __init__(self, output_sizes, key):
        self.output_sizes = output_sizes
        k1, k2, k3, k4 = jax.random.split(key, 4)
        # nn.Conv2d(256, 128, 1) weights, deterministic synthetic init.
        self.w1 = jax.random.normal(k1, (128, 256, 1, 1), jnp.float32) * 0.02
        self.b1 = jax.random.normal(k2, (128,), jnp.float32) * 0.02
        self.w2 = jax.random.normal(k3, (128, 256, 1, 1), jnp.float32) * 0.02
        self.b2 = jax.random.normal(k4, (128,), jnp.float32) * 0.02

    def __call__(self, hidden_states):
        feat_early = hidden_states[-1]
        feat_late = hidden_states[-2]
        out1 = head_branch(feat_early, self.output_sizes[0], self.w1, self.b1)
        out2 = head_branch(feat_late, self.output_sizes[1], self.w2, self.b2)
        return (out1, out2)


# ----------------------------------------------------------------------------
# Pure-JAX reference (gather-based bilinear then 1x1 conv, PyTorch order).
# ----------------------------------------------------------------------------
def _ref_bilinear_align_corners(x_nchw, out_size):
    B, C, Hi, Wi = x_nchw.shape
    Ho, Wo = out_size
    ys = jnp.arange(Ho, dtype=jnp.float32) * (
        (Hi - 1) / (Ho - 1) if Ho > 1 else 0.0)
    xs = jnp.arange(Wo, dtype=jnp.float32) * (
        (Wi - 1) / (Wo - 1) if Wo > 1 else 0.0)
    y0 = jnp.clip(jnp.floor(ys).astype(jnp.int32), 0, Hi - 1)
    x0 = jnp.clip(jnp.floor(xs).astype(jnp.int32), 0, Wi - 1)
    y1 = jnp.minimum(y0 + 1, Hi - 1)
    x1 = jnp.minimum(x0 + 1, Wi - 1)
    wy = (ys - y0.astype(jnp.float32))[None, None, :, None]
    wx = (xs - x0.astype(jnp.float32))[None, None, None, :]
    g = lambda yi, xi: x_nchw[:, :, yi, :][:, :, :, xi]
    top = g(y0, x0) * (1 - wx) + g(y0, x1) * wx
    bot = g(y1, x0) * (1 - wx) + g(y1, x1) * wx
    return top * (1 - wy) + bot * wy


def _ref_head_branch(feat, out_size, w, b):
    resized = _ref_bilinear_align_corners(feat, out_size)
    out = jnp.einsum("bchw,oc->bohw", resized, w[:, :, 0, 0])
    return out + b[None, :, None, None]


if __name__ == "__main__":
    key = jax.random.PRNGKey(0)
    k_feat1, k_feat2, k_params = jax.random.split(key, 3)

    # Small synthetic backbone hidden states (DPT fusion features have 256 ch).
    B, C, Hi, Wi = 2, 256, 8, 8
    hidden_last = jax.random.normal(k_feat1, (B, C, Hi, Wi), jnp.float32)
    hidden_prev = jax.random.normal(k_feat2, (B, C, Hi, Wi), jnp.float32)
    hidden_states = [hidden_prev, hidden_last]   # [-2], [-1]

    # Branch 1 exercises the fused separable-resize path, branch 2 the identity path.
    output_sizes = [(16, 16), (8, 8)]
    model = MiDasEncoderPallas(output_sizes, k_params)

    out1, out2 = model(hidden_states)
    out1 = jax.block_until_ready(out1)
    out2 = jax.block_until_ready(out2)

    # Verify against pure-JAX reference of the head math (bf16 matmuls -> looser tol).
    ref1 = _ref_head_branch(hidden_states[-1], output_sizes[0], model.w1, model.b1)
    ref2 = _ref_head_branch(hidden_states[-2], output_sizes[1], model.w2, model.b2)
    np.testing.assert_allclose(np.asarray(out1), np.asarray(ref1), rtol=2e-2, atol=2e-2)
    np.testing.assert_allclose(np.asarray(out2), np.asarray(ref2), rtol=2e-2, atol=2e-2)

    assert out1.shape == (B, 128, 16, 16) and out2.shape == (B, 128, 8, 8)
    print("KERNEL_OK")
</pallas_src>

<mosaic_0001>
module attributes {stable_mosaic.version = 11 : i64} {
  func.func @_conv1x1_bias_kernel(%arg0: i32, %arg1: i32, %arg2: memref<1x256x64xf32, #tpu.memory_space<vmem>>, %arg3: memref<128x256xbf16, #tpu.memory_space<vmem>>, %arg4: memref<128x1xf32, #tpu.memory_space<vmem>>, %arg5: memref<1x128x64xbf16, #tpu.memory_space<vmem>>) attributes {dimension_semantics = [#tpu.dimension_semantics<parallel>, #tpu.dimension_semantics<parallel>], iteration_bounds = array<i64: 2, 1>, scalar_prefetch = 0 : i64, scratch_operands = 0 : i64, tpu.core_type = #tpu.core_type<tc>, window_params = [{transform_indices = @transform_0, window_bounds = array<i64: 1, 256, 64>}, {pipeline_mode = #tpu.pipeline_mode<synchronous>, transform_indices = @transform_1, window_bounds = array<i64: 128, 256>}, {pipeline_mode = #tpu.pipeline_mode<synchronous>, transform_indices = @transform_2, window_bounds = array<i64: 128, 1>}, {transform_indices = @transform_3, window_bounds = array<i64: 1, 128, 64>}]} {
    %c0 = arith.constant 0 : index
    %c0_0 = arith.constant 0 : index
    %c0_1 = arith.constant 0 : index
    %0 = vector.load %arg2[%c0, %c0_0, %c0_1] : memref<1x256x64xf32, #tpu.memory_space<vmem>>, vector<1x256x64xf32>
    %1 = vector.shape_cast %0 : vector<1x256x64xf32> to vector<256x64xf32>
    %2 = arith.truncf %1 : vector<256x64xf32> to vector<256x64xbf16>
    %c0_2 = arith.constant 0 : index
    %c0_3 = arith.constant 0 : index
    %3 = vector.load %arg3[%c0_2, %c0_3] : memref<128x256xbf16, #tpu.memory_space<vmem>>, vector<128x256xbf16>
    %cst = arith.constant dense<0.000000e+00> : vector<128x64xf32>
    %4 = tpu.matmul %3, %2, %cst {dimension_numbers = #tpu.dot_dimension_numbers<[1], [0], [0], [1], [0, 0, 1, 1], [], []>} : vector<128x256xbf16>, vector<256x64xbf16>, vector<128x64xf32> -> vector<128x64xf32>
    %c0_4 = arith.constant 0 : index
    %c0_5 = arith.constant 0 : index
    %5 = vector.load %arg4[%c0_4, %c0_5] : memref<128x1xf32, #tpu.memory_space<vmem>>, vector<128x1xf32>
    %6 = vector.broadcast %5 : vector<128x1xf32> to vector<128x64xf32>
    %7 = arith.addf %4, %6 : vector<128x64xf32>
    %8 = arith.truncf %7 : vector<128x64xf32> to vector<128x64xbf16>
    %c0_6 = arith.constant 0 : index
    %c0_7 = arith.constant 0 : index
    %c0_8 = arith.constant 0 : index
    %9 = vector.load %arg5[%c0_6, %c0_7, %c0_8] : memref<1x128x64xbf16, #tpu.memory_space<vmem>>, vector<1x128x64xbf16>
    %10 = vector.shape_cast %9 : vector<1x128x64xbf16> to vector<128x64xbf16>
    %11 = vector.shape_cast %8 : vector<128x64xbf16> to vector<1x128x64xbf16>
    tpu.vector_store %arg5[%c0_6, %c0_7, %c0_8], %11 {strides = array<i32>} : memref<1x128x64xbf16, #tpu.memory_space<vmem>>, vector<1x128x64xbf16>,
    return
  }
  func.func @transform_0(%arg0: i32, %arg1: i32) -> (i32, i32, i32) {
    %c0_i32 = arith.constant 0 : i32
    %c0_i32_0 = arith.constant 0 : i32
    return %arg0, %c0_i32, %arg1 : i32, i32, i32
  }
  func.func @transform_1(%arg0: i32, %arg1: i32) -> (i32, i32) {
    %c0_i32 = arith.constant 0 : i32
    %c0_i32_0 = arith.constant 0 : i32
    %c0_i32_1 = arith.constant 0 : i32
    return %c0_i32, %c0_i32_0 : i32, i32
  }
  func.func @transform_2(%arg0: i32, %arg1: i32) -> (i32, i32) {
    %c0_i32 = arith.constant 0 : i32
    %c0_i32_0 = arith.constant 0 : i32
    %c0_i32_1 = arith.constant 0 : i32
    return %c0_i32, %c0_i32_0 : i32, i32
  }
  func.func @transform_3(%arg0: i32, %arg1: i32) -> (i32, i32, i32) {
    %c0_i32 = arith.constant 0 : i32
    %c0_i32_0 = arith.constant 0 : i32
    return %arg0, %c0_i32, %arg1 : i32, i32, i32
  }
}

</mosaic_0001>

<bundles_post_ra>
// kernel: tpu_custom_call.1
= control target key start
LH: loop header
LB: loop body
LE: loop exit
PB: predicated region body
PF: predicated region fallthrough
CT: control target
= control target key end

     0   :  { %s941_s12 = smov 0   ;;  %s943_s13 = smov 0   ;;  %s1154_s0 = inlined_call_operand.vmem [shape: f32[2,256,64], index: 0, kind: input, shape index: {}]   ;;  %s1155_s1 = inlined_call_operand.vmem [shape: bf16[128,256], index: 1, kind: input, shape index: {}]   ;;  %s1156_s2 = inlined_call_operand.vmem [shape: f32[128,1], index: 2, kind: input, shape index: {}]   ;;  %s1157_s3 = inlined_call_operand.vmem [shape: bf16[2,128,64], index: 3, kind: output, shape index: {}]  }
   0x1   :  { %s945_s14 = smov 0  }
   0x2 LB: > { %s25_s15 = sadd.s32 1, %s914_s13  ;;  %p708_p0 = scmp.ge.s32.totalorder %s918_s14, 1  ;;  %s918_s14 = sphi %s945_s14, %s13_s14   ;;  %s914_s13 = sphi %s943_s13, %s1159_s13   ;;  %s910_s12 = sphi %s941_s12, %s1158_s12  }
   0x3   : > { %p27_p1 = scmp.ge.s32.totalorder %s25_s15, 2  ;;  %p156_p2 = scmp.lt.s32.totalorder %s918_s14, 3 }
   0x5   : > { %s1161_s15 = smov (%p27_p1, %s25_s15), 0  ;;  %p157_p3 = pnand %p708_p0, %p156_p2 }
   0x6   : > { %p186_p4 = scmp.lt.s32.totalorder (!%p157_p3), %s910_s12, 1  ;;  %v874_v0 = vld [vmem:[%s1155_s1 + $0x4] ss:$8 sps:$4 sm:$0xff] (!%p157_p3)   ;;  %v920_v1 = vmov (!%p157_p3), 0   ;;  %v269_v34 = vld [vmem:[%s1156_s2 + $0x10] sm:$0xff] (!%p157_p3)  ;;  %v270_v42 = vld [vmem:[%s1156_s2 + $0x18] sm:$0xff] (!%p157_p3) }
   0x7   : > { %160 = sbr.rel (%p157_p3) target bundleno = 298 (0x12a), region = 32  ;;  %871 = vset.pattern.permute.xlu1 (!%p157_p3), %v920_v1  ;;  %870 = vset.pattern.permute.xlu0 (!%p157_p3), %v920_v1  ;;  %v877_v2 = vld [vmem:[%s1155_s1 + $0x44] ss:$8 sps:$4 sm:$0xff] (!%p157_p3)   ;;  %v274_v56 = vld [vmem:[%s1156_s2 + $0x38] sm:$0xff] (!%p157_p3)  ;;  %v273_v57 = vld [vmem:[%s1156_s2 + $0x30] sm:$0xff] (!%p157_p3)  ;;  %vm604_vm0 = vcmask (!%p157_p3), 519168  }
   0x8   : > { %475 = vmatprep.mubr.bf16.mxu0 (!%p157_p3), %v874_v0  ;;  %507 = vmatprep.mubr.bf16.mxu1 (!%p157_p3), %v877_v2  ;;  %v267_v35 = vld [vmem:[%s1156_s2] sm:$0xff] (!%p157_p3)  ;;  %v268_v43 = vld [vmem:[%s1156_s2 + $0x8] sm:$0xff] (!%p157_p3)  ;;  %v878_v63 = vld [vmem:[%s1155_s1 + $0x14] ss:$8 sps:$4 sm:$0xff] (!%p157_p3)  }
   0x9   : > { %295 = vperm.xlu1 (!%p157_p3), %871, %v269_v34   ;;  %285 = vperm.xlu0 (!%p157_p3), %870, %v267_v35   ;;  %v272_v50 = vld [vmem:[%s1156_s2 + $0x28] sm:$0xff] (!%p157_p3)  ;;  %v271_v51 = vld [vmem:[%s1156_s2 + $0x20] sm:$0xff] (!%p157_p3)  ;;  %v880_v0 = vld [vmem:[%s1155_s1 + $0x54] ss:$8 sps:$4 sm:$0xff] (!%p157_p3)  }
   0xa   : > { %v872_v59 = vld [vmem:[%s1155_s1] ss:$8 sps:$4 sm:$0xff] (!%p157_p3)   ;;  %v278_v1 = vld [vmem:[%s1156_s2 + $0x58] sm:$0xff] (!%p157_p3)  ;;  %v277_v2 = vld [vmem:[%s1156_s2 + $0x50] sm:$0xff] (!%p157_p3) }
   0xb   : > { %v875_v60 = vld [vmem:[%s1155_s1 + $0x40] ss:$8 sps:$4 sm:$0xff] (!%p157_p3)  }
   0xc   : > { %v276_v61 = vld [vmem:[%s1156_s2 + $0x48] sm:$0xff] (!%p157_p3)  ;;  %v275_v62 = vld [vmem:[%s1156_s2 + $0x40] sm:$0xff] (!%p157_p3) }
   0xd   : > { %300 = vperm.xlu1 (!%p157_p3), %871, %v270_v42   ;;  %290 = vperm.xlu0 (!%p157_p3), %870, %v268_v43  }
   0xe   : > { %s1163_s12 = smov (!%p186_p4, %s910_s12), 1 }
   0xf   : > { %s747_s20 = sshll.u32 %s1163_s12, 8  ;;  %s748_s11 = sshll.u32 %s1163_s12, 6 }
  0x10   : > { %s971_s23 = scalar_lea.vmem %s1154_s0, %s747_s20  ;;  %s1107_s18 = scalar_lea.vmem %s1157_s3, %s748_s11 }
  0x11   : > { %v219_v3 = vld [vmem:[%s971_s23 + $0x80] sm:$0xff]  ;;  %v220_v4 = vld [vmem:[%s971_s23 + $0x88] sm:$0xff]  ;;  %v221_v8 = vld [vmem:[%s971_s23 + $0x90] sm:$0xff]  ;;  %310 = vperm.xlu1 %871, %v272_v50   ;;  %305 = vperm.xlu0 %870, %v271_v51  }
  0x12   : > { %v203_v5 = vld [vmem:[%s971_s23] sm:$0xff]  ;;  %v243_v6 = vpack.c.bf16 %v220_v4, %v219_v3  ;;  %v204_v7 = vld [vmem:[%s971_s23 + $0x8] sm:$0xff]  ;;  %v222_v9 = vld [vmem:[%s971_s23 + $0x98] sm:$0xff] }
  0x13   : > { %v235_v10 = vpack.c.bf16 %v204_v7, %v203_v5  ;;  %v244_v11 = vpack.c.bf16 %v222_v9, %v221_v8  ;;  %v205_v12 = vld [vmem:[%s971_s23 + $0x10] sm:$0xff]  ;;  %v206_v13 = vld [vmem:[%s971_s23 + $0x18] sm:$0xff]  ;;  %v223_v14 = vld [vmem:[%s971_s23 + $0xa0] sm:$0xff] }
  0x14   : > { %765 = vmatprep.subr.bf16.mxu0 %v243_v6  ;;  %829 = vmatprep.subr.bf16.mxu1 %v243_v6  ;;  %v224_v15 = vld [vmem:[%s971_s23 + $0xa8] sm:$0xff]  ;;  %v236_v16 = vpack.c.bf16 %v206_v13, %v205_v12  ;;  %v207_v18 = vld [vmem:[%s971_s23 + $0x20] sm:$0xff]  ;;  %v225_v20 = vld [vmem:[%s971_s23 + $0xb0] sm:$0xff] }
  0x15   : > { %766 = vmatpush3.bf16.msra.mxu0 %v235_v10  ;;  %837 = vmatpush3.bf16.msra.mxu1 %v235_v10  ;;  %v245_v17 = vpack.c.bf16 %v224_v15, %v223_v14  ;;  %v208_v19 = vld [vmem:[%s971_s23 + $0x28] sm:$0xff]  ;;  %v226_v21 = vld [vmem:[%s971_s23 + $0xb8] sm:$0xff]  ;;  %v209_v24 = vld [vmem:[%s971_s23 + $0x30] sm:$0xff] }
  0x16   : > { %767 = vmatprep.subr.bf16.mxu0 %v244_v11  ;;  %830 = vmatprep.subr.bf16.mxu1 %v244_v11  ;;  %v237_v22 = vpack.c.bf16 %v208_v19, %v207_v18  ;;  %v246_v23 = vpack.c.bf16 %v226_v21, %v225_v20  ;;  %v210_v25 = vld [vmem:[%s971_s23 + $0x38] sm:$0xff]  ;;  %v227_v26 = vld [vmem:[%s971_s23 + $0xc0] sm:$0xff]  ;;  %v228_v27 = vld [vmem:[%s971_s23 + $0xc8] sm:$0xff] }
  0x17   : > { %v238_v28 = vpack.c.bf16 %v210_v25, %v209_v24  ;;  %v211_v29 = vld [vmem:[%s971_s23 + $0x40] sm:$0xff]  ;;  %v247_v30 = vpack.c.bf16 %v228_v27, %v227_v26  ;;  %v212_v31 = vld [vmem:[%s971_s23 + $0x48] sm:$0xff]  ;;  %v229_v32 = vld [vmem:[%s971_s23 + $0xd0] sm:$0xff]  ;;  %320 = vperm.xlu1 %871, %v274_v56   ;;  %315 = vperm.xlu0 %870, %v273_v57  }
  0x18   : > { %v230_v33 = vld [vmem:[%s971_s23 + $0xd8] sm:$0xff]  ;;  %v239_v36 = vpack.c.bf16 %v212_v31, %v211_v29  ;;  %v213_v38 = vld [vmem:[%s971_s23 + $0x50] sm:$0xff]  ;;  %v231_v40 = vld [vmem:[%s971_s23 + $0xe0] sm:$0xff] }
  0x19   : > { %768 = vmatpush3.bf16.msra.mxu0 %v236_v16  ;;  %838 = vmatpush3.bf16.msra.mxu1 %v236_v16  ;;  %v248_v37 = vpack.c.bf16 %v230_v33, %v229_v32  ;;  %v214_v39 = vld [vmem:[%s971_s23 + $0x58] sm:$0xff]  ;;  %v232_v41 = vld [vmem:[%s971_s23 + $0xe8] sm:$0xff]  ;;  %v215_v46 = vld [vmem:[%s971_s23 + $0x60] sm:$0xff] }
  0x1a   : > { %769 = vmatprep.subr.bf16.mxu0 %v245_v17  ;;  %831 = vmatprep.subr.bf16.mxu1 %v245_v17  ;;  %v240_v44 = vpack.c.bf16 %v214_v39, %v213_v38  ;;  %v249_v45 = vpack.c.bf16 %v232_v41, %v231_v40  ;;  %v216_v47 = vld [vmem:[%s971_s23 + $0x68] sm:$0xff]  ;;  %v233_v48 = vld [vmem:[%s971_s23 + $0xf0] sm:$0xff]  ;;  %v234_v49 = vld [vmem:[%s971_s23 + $0xf8] sm:$0xff] }
  0x1b   : > { %v241_v52 = vpack.c.bf16 %v216_v47, %v215_v46  ;;  %v250_v53 = vpack.c.bf16 %v234_v49, %v233_v48  ;;  %v217_v54 = vld [vmem:[%s971_s23 + $0x70] sm:$0xff]  ;;  %v218_v55 = vld [vmem:[%s971_s23 + $0x78] sm:$0xff]  ;;  %330 = vperm.xlu1 %871, %v276_v61   ;;  %325 = vperm.xlu0 %870, %v275_v62   ;;  %v280_v5 = vld [vmem:[%s1156_s2 + $0x68] sm:$0xff] }
  0x1c   : > { %v242_v58 = vpack.c.bf16 %v218_v55, %v217_v54  ;;  %v882_v3 = vld [vmem:[%s1155_s1 + $0x10] ss:$8 sps:$4 sm:$0xff]   ;;  %v279_v6 = vld [vmem:[%s1156_s2 + $0x60] sm:$0xff]  ;;  %v890_v13 = vld [vmem:[%s1155_s1 + $0x34] ss:$8 sps:$4 sm:$0xff]  }
  0x1d   : > { %770 = vmatpush3.bf16.msra.mxu0 %v237_v22  ;;  %839 = vmatpush3.bf16.msra.mxu1 %v237_v22  ;;  %v883_v4 = vld [vmem:[%s1155_s1 + $0x50] ss:$8 sps:$4 sm:$0xff]   ;;  %v884_v7 = vld [vmem:[%s1155_s1 + $0x24] ss:$8 sps:$4 sm:$0xff]   ;;  %v888_v11 = vld [vmem:[%s1155_s1 + $0x20] ss:$8 sps:$4 sm:$0xff]  }
  0x1e   : > { %771 = vmatprep.subr.bf16.mxu0 %v246_v23  ;;  %832 = vmatprep.subr.bf16.mxu1 %v246_v23  ;;  %v886_v8 = vld [vmem:[%s1155_s1 + $0x64] ss:$8 sps:$4 sm:$0xff]   ;;  %v282_v9 = vld [vmem:[%s1156_s2 + $0x78] sm:$0xff]  ;;  %v281_v10 = vld [vmem:[%s1156_s2 + $0x70] sm:$0xff] }
  0x1f   : > { %340 = vperm.xlu1 %871, %v278_v1   ;;  %335 = vperm.xlu0 %870, %v277_v2   ;;  %v889_v12 = vld [vmem:[%s1155_s1 + $0x60] ss:$8 sps:$4 sm:$0xff]   ;;  %v892_v14 = vld [vmem:[%s1155_s1 + $0x74] ss:$8 sps:$4 sm:$0xff]   ;;  %v894_v15 = vld [vmem:[%s1155_s1 + $0x30] ss:$8 sps:$4 sm:$0xff]  }
  0x20   : > { %v895_v16 = vld [vmem:[%s1155_s1 + $0x70] ss:$8 sps:$4 sm:$0xff]  }
  0x21   : > { %772 = vmatpush3.bf16.msra.mxu0 %v238_v28  ;;  %840 = vmatpush3.bf16.msra.mxu1 %v238_v28 }
  0x22   : > { %773 = vmatprep.subr.bf16.mxu0 %v247_v30  ;;  %833 = vmatprep.subr.bf16.mxu1 %v247_v30 }
  0x23   : > { %350 = vperm.xlu1 %871, %v280_v5   ;;  %345 = vperm.xlu0 %870, %v279_v6  }
  0x25   : > { %774 = vmatpush3.bf16.msra.mxu0 %v239_v36  ;;  %841 = vmatpush3.bf16.msra.mxu1 %v239_v36 }
  0x26   : > { %775 = vmatprep.subr.bf16.mxu0 %v248_v37  ;;  %834 = vmatprep.subr.bf16.mxu1 %v248_v37 }
  0x27   : > { %360 = vperm.xlu1 %871, %v282_v9   ;;  %355 = vperm.xlu0 %870, %v281_v10  }
  0x29   : > { %776 = vmatpush3.bf16.msra.mxu0 %v240_v44  ;;  %842 = vmatpush3.bf16.msra.mxu1 %v240_v44 }
  0x2a   : > { %777 = vmatprep.subr.bf16.mxu0 %v249_v45  ;;  %835 = vmatprep.subr.bf16.mxu1 %v249_v45 }
  0x2d   : > { %778 = vmatpush3.bf16.msra.mxu0 %v241_v52  ;;  %843 = vmatpush3.bf16.msra.mxu1 %v241_v52 }
  0x2e   : > { %779 = vmatprep.subr.bf16.mxu0 %v250_v53  ;;  %836 = vmatprep.subr.bf16.mxu1 %v250_v53 }
  0x31   : > { %780 = vmatpush3.bf16.msra.mxu0 %v242_v58  ;;  %844 = vmatpush3.bf16.msra.mxu1 %v242_v58 }
  0x34   : > { %476 = vmatmul.mubr.bf16.vlgmr.msra.gmra.mrb[0].mxu0 %v872_v59  ;;  %508 = vmatmul.mubr.bf16.vlgmr.msra.gmra.mrb[0].mxu1 %v875_v60 }
  0x35   : > { %483 = vmatprep.mubr.bf16.mxu0 %v878_v63  ;;  %515 = vmatprep.mubr.bf16.mxu1 %v880_v0 }
  0x3c   : > { %484 = vmatmul.mubr.bf16.gmra.mrb[4].mxu0 %v882_v3  ;;  %516 = vmatmul.mubr.bf16.gmra.mrb[4].mxu1 %v883_v4 }
  0x3d   : > { %491 = vmatprep.mubr.bf16.mxu0 %v884_v7  ;;  %523 = vmatprep.mubr.bf16.mxu1 %v886_v8 }
  0x44   : > { %492 = vmatmul.mubr.bf16.gmra.mrb[8].mxu0 %v888_v11  ;;  %524 = vmatmul.mubr.bf16.gmra.mrb[8].mxu1 %v889_v12 }
  0x45   : > { %499 = vmatprep.mubr.bf16.mxu0 %v890_v13  ;;  %531 = vmatprep.mubr.bf16.mxu1 %v892_v14 }
  0x4c   : > { %500 = vmatmul.mubr.bf16.gmra.mrb[12].mxu0 %v894_v15  ;;  %532 = vmatmul.mubr.bf16.gmra.mrb[12].mxu1 %v895_v16 }
  0x88   : > { %v286_v17 = vpop.permute.xlu0 %285  ;;  %v296_v18 = vpop.permute.xlu1 %295 }
  0x8c   : > { %v291_v19 = vpop.permute.xlu0 %290  ;;  %v301_v20 = vpop.permute.xlu1 %300 }
  0x90   : > { %v1095_v21 = vpop.permute.xlu0 %305  ;;  %v1097_v22 = vpop.permute.xlu1 %310 }
  0x96   : > { %v1099_v23 = vpop.permute.xlu0 %315  ;;  %v1101_v24 = vpop.permute.xlu1 %320 }
  0x9a   : > { %v326_v25 = vpop.permute.xlu0 %325  ;;  %v331_v40 = vpop.permute.xlu1 %330 }
  0x9e   : > { %v336_v45 = vpop.permute.xlu0 %335  ;;  %v341_v62 = vpop.permute.xlu1 %340 }
  0xa2   : > { %v346_v3 = vpop.permute.xlu0 %345 }
 0x107   : > { %v781_v26 = vpop.f32.mrb[0].mxu0  ;;  %v805_v27 = vpop.f32.mrb[0].mxu1 }
 0x108   : > { %v782_v28 = vpop.f32.mrb[1].mxu0  ;;  %v806_v29 = vpop.f32.mrb[1].mxu1 }
 0x109   : > { %v783_v30 = vadd.f32 %v782_v28, %v781_v26  ;;  %v807_v31 = vadd.f32 %v806_v29, %v805_v27  ;;  %v784_v32 = vpop.f32.mrb[2].mxu0  ;;  %v808_v33 = vpop.f32.mrb[2].mxu1 }
 0x10a   : > { %v785_v34 = vpop.f32.mrb[3].mxu0  ;;  %v809_v35 = vpop.f32.mrb[3].mxu1 }
 0x10b   : > { %v478_v36 = vadd.f32 %v783_v30, %v286_v17  ;;  %v510_v37 = vadd.f32 %v807_v31, %v326_v25  ;;  %v786_v38 = vadd.f32 %v785_v34, %v784_v32  ;;  %v810_v39 = vadd.f32 %v809_v35, %v808_v33  ;;  %v356_v29 = vpop.permute.xlu0 %355 }
 0x10d   : > { %v749_v41 = vpack.c.bf16 %v478_v36, %v478_v36  ;;  %v757_v42 = vpack.c.bf16 %v510_v37, %v510_v37  ;;  %v481_v43 = vadd.f32 %v786_v38, %v291_v19  ;;  %v513_v44 = vadd.f32 %v810_v39, %v331_v40 }
 0x10f   : > { %605 = vst.msk [vmem:[%s1107_s18] sm:$0xf] %vm604_vm0, %v749_v41  ;;  %613 = vst.msk [vmem:[%s1107_s18 + $0x20] sm:$0xf] %vm604_vm0, %v757_v42  ;;  %v750_v46 = vpack.c.bf16 %v481_v43, %v481_v43  ;;  %v758_v47 = vpack.c.bf16 %v513_v44, %v513_v44  ;;  %v787_v48 = vpop.f32.mrb[4].mxu0  ;;  %v811_v49 = vpop.f32.mrb[4].mxu1 }
 0x110   : > { %v788_v50 = vpop.f32.mrb[5].mxu0  ;;  %v812_v51 = vpop.f32.mrb[5].mxu1 }
 0x111   : > { %606 = vst.msk [vmem:[%s1107_s18 + $0x4] sm:$0xf] %vm604_vm0, %v750_v46  ;;  %614 = vst.msk [vmem:[%s1107_s18 + $0x24] sm:$0xf] %vm604_vm0, %v758_v47  ;;  %v789_v52 = vadd.f32 %v788_v50, %v787_v48  ;;  %v813_v53 = vadd.f32 %v812_v51, %v811_v49  ;;  %v790_v54 = vpop.f32.mrb[6].mxu0  ;;  %v814_v55 = vpop.f32.mrb[6].mxu1 }
 0x112   : > { %v791_v56 = vpop.f32.mrb[7].mxu0  ;;  %v815_v57 = vpop.f32.mrb[7].mxu1 }
 0x113   : > { %v486_v58 = vadd.f32 %v789_v52, %v296_v18  ;;  %v518_v59 = vadd.f32 %v813_v53, %v336_v45  ;;  %v792_v60 = vadd.f32 %v791_v56, %v790_v54  ;;  %v816_v61 = vadd.f32 %v815_v57, %v814_v55 }
 0x115   : > { %v751_v63 = vpack.c.bf16 %v486_v58, %v486_v58  ;;  %v759_v0 = vpack.c.bf16 %v518_v59, %v518_v59  ;;  %v489_v1 = vadd.f32 %v792_v60, %v301_v20  ;;  %v521_v2 = vadd.f32 %v816_v61, %v341_v62  ;;  %v351_v20 = vpop.permute.xlu1 %350 }
 0x117   : > { %607 = vst.msk [vmem:[%s1107_s18 + $0x8] sm:$0xf] %vm604_vm0, %v751_v63  ;;  %615 = vst.msk [vmem:[%s1107_s18 + $0x28] sm:$0xf] %vm604_vm0, %v759_v0  ;;  %v752_v4 = vpack.c.bf16 %v489_v1, %v489_v1  ;;  %v760_v5 = vpack.c.bf16 %v521_v2, %v521_v2  ;;  %v793_v6 = vpop.f32.mrb[8].mxu0  ;;  %v817_v7 = vpop.f32.mrb[8].mxu1 }
 0x118   : > { %v794_v8 = vpop.f32.mrb[9].mxu0  ;;  %v818_v9 = vpop.f32.mrb[9].mxu1 }
 0x119   : > { %608 = vst.msk [vmem:[%s1107_s18 + $0xc] sm:$0xf] %vm604_vm0, %v752_v4  ;;  %616 = vst.msk [vmem:[%s1107_s18 + $0x2c] sm:$0xf] %vm604_vm0, %v760_v5  ;;  %v795_v10 = vadd.f32 %v794_v8, %v793_v6  ;;  %v819_v11 = vadd.f32 %v818_v9, %v817_v7  ;;  %v796_v12 = vpop.f32.mrb[10].mxu0  ;;  %v820_v13 = vpop.f32.mrb[10].mxu1 }
 0x11a   : > { %v797_v14 = vpop.f32.mrb[11].mxu0  ;;  %v821_v15 = vpop.f32.mrb[11].mxu1 }
 0x11b   : > { %v494_v16 = vadd.f32 %v795_v10, %v1095_v21  ;;  %v526_v17 = vadd.f32 %v819_v11, %v346_v3  ;;  %v798_v18 = vadd.f32 %v797_v14, %v796_v12  ;;  %v822_v19 = vadd.f32 %v821_v15, %v820_v13  ;;  %v361_v44 = vpop.permute.xlu1 %360 }
 0x11d   : > { %v753_v25 = vpack.c.bf16 %v494_v16, %v494_v16  ;;  %v761_v26 = vpack.c.bf16 %v526_v17, %v526_v17  ;;  %v497_v27 = vadd.f32 %v798_v18, %v1097_v22  ;;  %v529_v28 = vadd.f32 %v822_v19, %v351_v20 }
 0x11f   : > { %609 = vst.msk [vmem:[%s1107_s18 + $0x10] sm:$0xf] %vm604_vm0, %v753_v25  ;;  %617 = vst.msk [vmem:[%s1107_s18 + $0x30] sm:$0xf] %vm604_vm0, %v761_v26  ;;  %v754_v30 = vpack.c.bf16 %v497_v27, %v497_v27  ;;  %v762_v31 = vpack.c.bf16 %v529_v28, %v529_v28  ;;  %v799_v32 = vpop.f32.mrb[12].mxu0  ;;  %v823_v21 = vpop.f32.mrb[12].mxu1 }
 0x120   : > { %v800_v33 = vpop.f32.mrb[13].mxu0  ;;  %v824_v34 = vpop.f32.mrb[13].mxu1 }
 0x121   : > { %610 = vst.msk [vmem:[%s1107_s18 + $0x14] sm:$0xf] %vm604_vm0, %v754_v30  ;;  %618 = vst.msk [vmem:[%s1107_s18 + $0x34] sm:$0xf] %vm604_vm0, %v762_v31  ;;  %v801_v35 = vadd.f32 %v800_v33, %v799_v32  ;;  %v825_v22 = vadd.f32 %v824_v34, %v823_v21  ;;  %v802_v36 = vpop.f32.mrb[14].mxu0  ;;  %v826_v37 = vpop.f32.mrb[14].mxu1 }
 0x122   : > { %v803_v38 = vpop.f32.mrb[15].mxu0  ;;  %v827_v39 = vpop.f32.mrb[15].mxu1 }
 0x123   : > { %v502_v40 = vadd.f32 %v801_v35, %v1099_v23  ;;  %v534_v41 = vadd.f32 %v825_v22, %v356_v29  ;;  %v804_v42 = vadd.f32 %v803_v38, %v802_v36  ;;  %v828_v43 = vadd.f32 %v827_v39, %v826_v37 }
 0x125   : > { %v755_v45 = vpack.c.bf16 %v502_v40, %v502_v40  ;;  %v763_v46 = vpack.c.bf16 %v534_v41, %v534_v41  ;;  %v505_v47 = vadd.f32 %v804_v42, %v1101_v24  ;;  %v537_v48 = vadd.f32 %v828_v43, %v361_v44 }
 0x127   : > { %611 = vst.msk [vmem:[%s1107_s18 + $0x18] sm:$0xf] %vm604_vm0, %v755_v45  ;;  %619 = vst.msk [vmem:[%s1107_s18 + $0x38] sm:$0xf] %vm604_vm0, %v763_v46  ;;  %v756_v49 = vpack.c.bf16 %v505_v47, %v505_v47  ;;  %v764_v50 = vpack.c.bf16 %v537_v48, %v537_v48 }
 0x129   : > { %612 = vst.msk [vmem:[%s1107_s18 + $0x1c] sm:$0xf] %vm604_vm0, %v756_v49  ;;  %620 = vst.msk [vmem:[%s1107_s18 + $0x3c] sm:$0xf] %vm604_vm0, %v764_v50 }
 0x12a PF: > { %s13_s14 = sadd.s32 1, %s918_s14   ;;  %s1158_s12 = smov %s914_s13 }
 0x12b   : > { %p10_p5 = scmp.ge.s32.totalorder %s13_s14, 4   ;;  %s1159_s13 = smov %s1161_s15 }
 0x12d   :  { %12 = sbr.rel (!%p10_p5) target bundleno = 2 (0x2), region = 62 }

</bundles_post_ra>
